<compile_context>
chip_gen: v7x
topology: tpu7x:2x2x1
jax: 0.10.0
libtpu: 0.0.40
codegen_flags: <defaults>
</compile_context>

<pallas_src>
import jax
import jax.numpy as jnp
from jax.experimental import pallas as pl
from jax.experimental.pallas import tpu as pltpu

_LANE = 128
_WIDE_LANE = 512               # wider lane slab when the tensor is big enough
_MAX_ROWS_PER_TILE = 1024      # 1024 x 512 f32 = 2 MiB/input tile; double-buffered
                               # (2 in + 1 out) stays well under every gen's VMEM.


# ---------------------------------------------------------------------------
# Kernels
# ---------------------------------------------------------------------------
def _residual_add_kernel(y_ref, x_ref, o_ref):
    # o = fn(x) + x, with fn(x) precomputed outside (arbitrary fn).
    o_ref[...] = y_ref[...] + x_ref[...]


def _make_fused_residual_kernel(elementwise_fn):
    # o = elementwise_fn(x) + x, fused: x read once, o written once.
    def kernel(x_ref, o_ref):
        x = x_ref[...]
        o_ref[...] = (elementwise_fn(x) + x).astype(o_ref.dtype)
    return kernel


# ---------------------------------------------------------------------------
# Layout / tiling helpers
# ---------------------------------------------------------------------------
def _pick_lanes(total):
    return _WIDE_LANE if total >= 8 * _WIDE_LANE else _LANE


def _lane_dense_2d(flat, lanes):
    """Reshape a flat array to (rows, lanes) with lanes a multiple of 128."""
    total = flat.shape[0]
    rows = pl.cdiv(total, lanes)
    pad = rows * lanes - total
    if pad:
        flat = jnp.pad(flat, (0, pad))
    return flat.reshape(rows, lanes)


def _row_tile(rows):
    # Either the whole row extent (block == full dim, always legal) or a
    # multiple-of-8 tile that keeps each buffer ~0.5-2 MiB for deep pipelining.
    return rows if rows <= _MAX_ROWS_PER_TILE else _MAX_ROWS_PER_TILE


def _tiled_elementwise_call(kernel, out_dtype, *arrays_2d):
    rows, lanes = arrays_2d[0].shape
    rt = _row_tile(rows)
    spec = pl.BlockSpec((rt, lanes), lambda i: (i, 0))
    return pl.pallas_call(
        kernel,
        out_shape=jax.ShapeDtypeStruct((rows, lanes), out_dtype),
        grid=(pl.cdiv(rows, rt),),
        in_specs=[spec] * len(arrays_2d),
        out_specs=spec,
        compiler_params=pltpu.CompilerParams(
            dimension_semantics=("parallel",),        # shard rows across TCs (v7x)
            vmem_limit_bytes=32 * 1024 * 1024,        # safe on v5e/v6e/v7x
        ),
    )(*arrays_2d)


# ---------------------------------------------------------------------------
# Public API
# ---------------------------------------------------------------------------
def residual_add_pallas(y, x):
    """Fused `y + x` over arbitrary-shaped tensors (lane-dense, row-tiled)."""
    assert y.shape == x.shape, (y.shape, x.shape)
    out_dtype = jnp.result_type(y.dtype, x.dtype)
    total = x.size
    lanes = _pick_lanes(total)
    y2 = _lane_dense_2d(y.reshape(-1).astype(out_dtype), lanes)
    x2 = _lane_dense_2d(x.reshape(-1).astype(out_dtype), lanes)
    out2 = _tiled_elementwise_call(_residual_add_kernel, out_dtype, y2, x2)
    return out2.reshape(-1)[:total].reshape(x.shape)


def residual_forward(x, fn, *args, elementwise_fn=None, **kwargs):
    """Residual.forward: fn(x, *args, **kwargs) + x.

    If `elementwise_fn` is supplied (fn is a pure per-element map with no extra
    args), the map and the residual add run as ONE fused Pallas pass.
    """
    if elementwise_fn is not None:
        total = x.size
        lanes = _pick_lanes(total)
        x2 = _lane_dense_2d(x.reshape(-1), lanes)
        out2 = _tiled_elementwise_call(
            _make_fused_residual_kernel(elementwise_fn), x.dtype, x2)
        return out2.reshape(-1)[:total].reshape(x.shape)

    # TODO(synk): `fn` is an arbitrary user-supplied module (attention etc. in
    # temporal_attention.py); it runs as plain JAX and only the `+ x` is fused.
    y = fn(x, *args, **kwargs)
    return residual_add_pallas(y, x)


# ---------------------------------------------------------------------------
# Demo / correctness check
# ---------------------------------------------------------------------------
if __name__ == "__main__":
    N, C, H, W = 2, 4, 16, 16
    key = jax.random.PRNGKey(0)
    x = jax.random.normal(key, (N, C, H, W), dtype=jnp.float32)

    # --- path 1: arbitrary (non-elementwise) fn: a deterministic channel mix ---
    w_mix = (jnp.eye(C, dtype=jnp.float32)
             + 0.01 * jnp.arange(C * C, dtype=jnp.float32).reshape(C, C))

    def channel_mix(t):
        return jnp.einsum("nchw,cd->ndhw", t, w_mix)

    out1 = residual_forward(x, channel_mix)
    out1 = jax.block_until_ready(out1)
    ref1 = channel_mix(x) + x
    assert out1.shape == (N, C, H, W)
    assert jnp.allclose(out1, ref1, atol=1e-5, rtol=1e-5)

    # --- path 2: elementwise fn fused into the kernel (single HBM pass) ---
    gelu = lambda t: jax.nn.gelu(t, approximate=True)
    out2 = residual_forward(x, gelu, elementwise_fn=gelu)
    out2 = jax.block_until_ready(out2)
    ref2 = gelu(x) + x
    assert out2.shape == (N, C, H, W)
    assert jnp.allclose(out2, ref2, atol=1e-5, rtol=1e-5)

    print("KERNEL_OK")
</pallas_src>

<mosaic_0001>
module attributes {stable_mosaic.version = 11 : i64} {
  func.func @_residual_add_kernel(%arg0: i32, %arg1: memref<16x128xf32, #tpu.memory_space<vmem>>, %arg2: memref<16x128xf32, #tpu.memory_space<vmem>>, %arg3: memref<16x128xf32, #tpu.memory_space<vmem>>) attributes {dimension_semantics = [#tpu.dimension_semantics<parallel>], iteration_bounds = array<i64: 1>, scalar_prefetch = 0 : i64, scratch_operands = 0 : i64, tpu.core_type = #tpu.core_type<tc>, window_params = [{transform_indices = @transform_0, window_bounds = array<i64: 16, 128>}, {transform_indices = @transform_1, window_bounds = array<i64: 16, 128>}, {transform_indices = @transform_2, window_bounds = array<i64: 16, 128>}]} {
    %c0 = arith.constant 0 : index
    %c0_0 = arith.constant 0 : index
    %0 = vector.load %arg1[%c0, %c0_0] : memref<16x128xf32, #tpu.memory_space<vmem>>, vector<16x128xf32>
    %c0_1 = arith.constant 0 : index
    %c0_2 = arith.constant 0 : index
    %1 = vector.load %arg2[%c0_1, %c0_2] : memref<16x128xf32, #tpu.memory_space<vmem>>, vector<16x128xf32>
    %2 = arith.addf %0, %1 : vector<16x128xf32>
    %c0_3 = arith.constant 0 : index
    %c0_4 = arith.constant 0 : index
    %3 = vector.load %arg3[%c0_3, %c0_4] : memref<16x128xf32, #tpu.memory_space<vmem>>, vector<16x128xf32>
    tpu.vector_store %arg3[%c0_3, %c0_4], %2 {strides = array<i32>} : memref<16x128xf32, #tpu.memory_space<vmem>>, vector<16x128xf32>,
    return
  }
  func.func @transform_0(%arg0: i32) -> (i32, i32) {
    %c0_i32 = arith.constant 0 : i32
    %c0_i32_0 = arith.constant 0 : i32
    return %arg0, %c0_i32 : i32, i32
  }
  func.func @transform_1(%arg0: i32) -> (i32, i32) {
    %c0_i32 = arith.constant 0 : i32
    %c0_i32_0 = arith.constant 0 : i32
    return %arg0, %c0_i32 : i32, i32
  }
  func.func @transform_2(%arg0: i32) -> (i32, i32) {
    %c0_i32 = arith.constant 0 : i32
    %c0_i32_0 = arith.constant 0 : i32
    return %arg0, %c0_i32 : i32, i32
  }
}

</mosaic_0001>

<bundles_post_ra>
// kernel: tpu_custom_call.1
= control target key start
LH: loop header
LB: loop body
LE: loop exit
PB: predicated region body
PF: predicated region fallthrough
CT: control target
= control target key end

     0   :  { %7 = vsyncpa [#allocation3], 0  ;;  %s208_s0 = inlined_call_operand.hbm [shape: f32[16,128], index: 0, kind: input, shape index: {}]   ;;  %s209_s1 = inlined_call_operand.hbm [shape: f32[16,128], index: 1, kind: input, shape index: {}]   ;;  %s210_s2 = inlined_call_operand.hbm [shape: f32[16,128], index: 2, kind: output, shape index: {}]  }
   0x1   :  { %8 = vsyncpa [#allocation6], 0 }
   0x2   :  { %9 = vsyncpa [#allocation4], 0  ;;  %s143_s9 = smov [#allocation2]   ;;  %s71_s13 = scalar_lea.hbm %s208_s0, 256 }
   0x3   :  { %s15_s10 = sshll.u32 %s143_s9, 4  ;;  %p72_p0 = scmp.ne.s32.totalorder %s208_s0, %s71_s13  ;;  %s16_s10 = int_to_ptr.vmem [resolvable:$true] %s15_s10 }
   0x4   :  { %p75_p1 = scmp.lt.u32.totalorder %s71_s13, %s208_s0 }
   0x6   :  { %p77_p2 = pnand %p75_p1, %p72_p0 }
   0x8   :  { %80 = shalt.err (!%p77_p2)
}
   0x9   :  { %s81_s18 = scalar_lea.vmem %s16_s10, 256  ;;  %p86_p4 = scmp.lt.s32.totalorder %s16_s10, %s16_s10 }
   0xa   :  { %p82_p3 = scmp.ne.s32.totalorder %s16_s10, %s81_s18  ;;  %p87_p5 = scmp.lt.s32.totalorder %s81_s18, %s81_s18 }
   0xc   :  { %p88_p6 = por %p87_p5, %p86_p4 }
   0xe   :  { %p89_p7 = pnand %p88_p6, %p82_p3 }
  0x10   :  { %92 = shalt.err (!%p89_p7)
}
  0x11   :  { %s144_s19 = smov 128   ;;  %s145_s20 = smov 8  }
  0x12   :  { %21 = dma.hbm_to_vmem [thread:$0]  %s208_s0, 256, %s16_s10, [#allocation3], %s144_s19, %s144_s19, %s145_s20  }
  0x13   :  { %s146_s23 = smov [#allocation5]   ;;  %s93_s27 = scalar_lea.hbm %s209_s1, 256 }
  0x14   :  { %s27_s24 = sshll.u32 %s146_s23, 4  ;;  %p94_p8 = scmp.ne.s32.totalorder %s209_s1, %s93_s27  ;;  %s28_s24 = int_to_ptr.vmem [resolvable:$true] %s27_s24 }
  0x15   :  { %p97_p9 = scmp.lt.u32.totalorder %s93_s27, %s209_s1 }
  0x17   :  { %p99_p10 = pnand %p97_p9, %p94_p8 }
  0x19   :  { %102 = shalt.err (!%p99_p10)
}
  0x1a   :  { %s103_s4 = scalar_lea.vmem %s28_s24, 256  ;;  %p108_p12 = scmp.lt.s32.totalorder %s28_s24, %s28_s24 }
  0x1b   :  { %p104_p11 = scmp.ne.s32.totalorder %s28_s24, %s103_s4  ;;  %p109_p13 = scmp.lt.s32.totalorder %s103_s4, %s103_s4 }
  0x1d   :  { %p110_p0 = por %p109_p13, %p108_p12 }
  0x1f   :  { %p111_p1 = pnand %p110_p0, %p104_p11 }
  0x21   :  { %114 = shalt.err (!%p111_p1)
}
  0x22   :  { %33 = dma.hbm_to_vmem [thread:$0]  %s209_s1, 256, %s28_s24, [#allocation6], %s144_s19, %s144_s19, %s145_s20  }
  0x23   :  { %137 = dma.done.wait [#allocation3], 256  }
  0x24   :  { %138 = vsyncadd [#allocation3], 4294967040 }
  0x25   :  { %139 = dma.done.wait [#allocation6], 256  }
  0x26   :  { %140 = vsyncadd [#allocation6], 4294967040  ;;  %s147_s6 = smov [#allocation7]   ;;  %v40_v0 = vld [vmem:[#allocation2] sm:$0xff]  ;;  %v42_v1 = vld [vmem:[#allocation5] sm:$0xff] }
  0x27   :  { %s53_s7 = sshll.u32 %s147_s6, 4  ;;  %v41_v2 = vld [vmem:[#allocation2 + $0x8] sm:$0xff]  ;;  %v44_v3 = vadd.f32 %v42_v1, %v40_v0  ;;  %v43_v4 = vld [vmem:[#allocation5 + $0x8] sm:$0xff]  ;;  %s54_s7 = int_to_ptr.vmem [resolvable:$true] %s53_s7 }
  0x28   :  { %v45_v5 = vadd.f32 %v43_v4, %v41_v2  ;;  %s115_s8 = scalar_lea.vmem %s54_s7, 256  ;;  %p120_p3 = scmp.lt.s32.totalorder %s54_s7, %s54_s7 }
  0x29   :  { %46 = vst [vmem:[#allocation7] sm:$0xff] %v44_v3  ;;  %p116_p2 = scmp.ne.s32.totalorder %s54_s7, %s115_s8  ;;  %p121_p4 = scmp.lt.s32.totalorder %s115_s8, %s115_s8 }
  0x2a   :  { %47 = vst [vmem:[#allocation7 + $0x8] sm:$0xff] %v45_v5 }
  0x2b   :  { %p122_p5 = por %p121_p4, %p120_p3 }
  0x2d   :  { %p123_p6 = pnand %p122_p5, %p116_p2 }
  0x2f   :  { %126 = shalt.err (!%p123_p6)
}
  0x30   :  { %s127_s10 = scalar_lea.hbm %s210_s2, 256 }
  0x31   :  { %p128_p7 = scmp.ne.s32.totalorder %s210_s2, %s127_s10  ;;  %p131_p8 = scmp.lt.u32.totalorder %s127_s10, %s210_s2 }
  0x33   :  { %p133_p9 = pnand %p131_p8, %p128_p7 }
  0x35   :  { %136 = shalt.err (!%p133_p9)
}
  0x36   :  { %59 = dma.vmem_to_hbm [thread:$0]  %s54_s7, 256, %s210_s2, [#allocation4], %s144_s19, %s144_s19, %s145_s20  }
  0x37   :  { %141 = dma.done.wait [#allocation4], 256  }
  0x38   :  { %142 = vsyncadd [#allocation4], 4294967040 }
  0x39   :  { %63 = vsyncpa [#allocation3], 1 }
  0x3a   :  { %64 = vsyncpa [#allocation6], 1 }
  0x3b   :  { %65 = vsyncpa [#allocation4], 1 }

</bundles_post_ra>
